<compile_context>
chip_gen: v7x
topology: tpu7x:2x2x1
jax: 0.10.0
libtpu: 0.0.40
codegen_flags: <defaults>
</compile_context>

<pallas_src>
import functools

import jax
import jax.numpy as jnp
from jax.experimental import pallas as pl
from jax.experimental.pallas import tpu as pltpu


def _frn_kernel(eps_ref, x_ref, w_ref, b_ref, o_ref, *, inv_hw):
    # x_ref: (TR, HW) tile of rows; w_ref/b_ref: (TR, 1) per-row scale/shift.
    # eps_ref (SMEM, f32[1]): abs(eps) precomputed in the wrapper.
    # inv_hw: Python float baked into the kernel (1.0 / HW).

    # Sum of squares in f32; the casted copy is only live for the reduction.
    xf = x_ref[...].astype(jnp.float32)                         # (TR, HW)
    nu2 = jnp.sum(xf * xf, axis=-1, keepdims=True) * inv_hw     # (TR, 1)

    # Fused per-row scale: one (TR,1) multiply instead of a full-tile multiply.
    scale = w_ref[...] * jax.lax.rsqrt(nu2 + eps_ref[0])        # (TR, 1)

    # Re-read x (cast per use) for the normalize/store; VMEM reloads are cheap
    # (vld slots have huge slack in this memory-bound kernel).
    o_ref[...] = (x_ref[...].astype(jnp.float32) * scale
                  + b_ref[...]).astype(o_ref.dtype)


def _tpu_params():
    """Generation-aware (target block bytes, VMEM budget, VMEM cap, #TCs)."""
    kind = ""
    try:
        kind = jax.devices()[0].device_kind.lower()
    except Exception:
        pass
    is_v7 = ("v7" in kind) or ("tpu7" in kind) or ("7x" in kind)

    vmem_cap = None
    try:
        vmem_cap = int(pltpu.get_tpu_info().vmem_capacity_bytes)
    except Exception:
        vmem_cap = None
    if vmem_cap is None or vmem_cap <= 0:
        # Conservative fallbacks: 64 MiB per TC on v7x, 128 MiB on v5e/v6e.
        vmem_cap = (64 if is_v7 else 128) * 1024 * 1024

    # v7x: ~3.2 TB/s HBM -> 2 MiB blocks leave ~20% step overhead; go bigger.
    target_bytes = (6 if is_v7 else 4) * 1024 * 1024
    num_tc = 2 if is_v7 else 1
    # Headroom under physical VMEM for compiler scratch / semaphores.
    vmem_budget = max(16 * 1024 * 1024, vmem_cap - 12 * 1024 * 1024)
    return target_bytes, vmem_budget, vmem_cap, num_tc


def _block_footprint(rows, hw, itemsize):
    """Estimated VMEM bytes: double-buffered in + out, plus f32 work space."""
    blk = rows * hw * itemsize
    f32_blk = rows * hw * 4
    return 4 * blk + 2 * f32_blk + (2 << 20)


def _choose_row_tile(nc, hw, itemsize, target_bytes, vmem_budget, num_tc):
    """Pick a row tile: dtype-aware sublane packing, generation-aware size."""
    # Sublane packing: 8 rows for 4-byte, 16 for 2-byte, 32 for 1-byte dtypes.
    packing = 8 * max(1, 4 // max(1, itemsize))
    if nc <= packing:
        # Single block equal to the full row extent (legal: equals array dim).
        return nc, packing

    row_bytes = max(1, hw * itemsize)

    # Target block size (amortize per-step grid overhead against HBM DMA).
    tr = max(packing, (target_bytes // row_bytes) // packing * packing)

    # Clamp so the pipelined VMEM footprint fits the per-generation budget.
    while tr > packing and _block_footprint(tr, hw, itemsize) > vmem_budget:
        tr = max(packing, (tr // 2) // packing * packing)

    # v7x megacore only: keep >= 4 grid steps (>= 2 per TC), but never shrink
    # the block below the per-generation target size.
    if num_tc > 1 and nc >= 4 * packing:
        tr4 = max(packing, (nc // 4) // packing * packing)
        if tr4 * row_bytes >= target_bytes:
            tr = min(tr, tr4)

    # Never exceed the largest multiple of packing inside NC (the remainder
    # becomes a ragged, masked last block).
    tr = min(tr, (nc // packing) * packing)
    return tr, packing


@jax.jit
def frn_norm_2d(x, weight, bias, eps):
    """FRNorm2D forward.

    Args:
      x:      (N, C, H, W) array (NCHW, matching the PyTorch module).
      weight: (C,) per-channel scale.
      bias:   (C,) per-channel shift.
      eps:    scalar learned epsilon (abs() is taken, as in the module).
    Returns:
      (N, C, H, W) array, same dtype as x.
    """
    N, C, H, W = x.shape
    NC, HW = N * C, H * W
    itemsize = jnp.dtype(x.dtype).itemsize

    target_bytes, vmem_budget, vmem_cap, num_tc = _tpu_params()
    tr, _ = _choose_row_tile(NC, HW, itemsize, target_bytes, vmem_budget, num_tc)
    grid = (pl.cdiv(NC, tr),)

    x2d = x.reshape(NC, HW)
    # Per-row (i.e. per (n, c)) scale / bias, shape (NC, 1), f32.
    w_rows = jnp.tile(weight.astype(jnp.float32), N).reshape(NC, 1)
    b_rows = jnp.tile(bias.astype(jnp.float32), N).reshape(NC, 1)
    # abs(eps) hoisted out of the kernel; lives in SMEM.
    eps_arr = jnp.abs(jnp.asarray(eps, jnp.float32)).reshape(1)

    # Derive the scoped-VMEM limit from the actual footprint (never above the
    # physical capacity; floor at the 32 MiB default so misc scratch fits).
    footprint = _block_footprint(tr, HW, itemsize)
    vmem_limit = int(min(vmem_cap, max(32 * 1024 * 1024, footprint)))

    kernel = functools.partial(_frn_kernel, inv_hw=float(1.0 / HW))

    # TODO(synk): sweep pipeline_mode=pl.Buffered(3) on the x/out specs on v7x
    # once measured; kept at the default double-buffering here.
    out2d = pl.pallas_call(
        kernel,
        out_shape=jax.ShapeDtypeStruct((NC, HW), x.dtype),
        grid_spec=pltpu.PrefetchScalarGridSpec(
            num_scalar_prefetch=0,
            grid=grid,
            in_specs=[
                # abs(eps) scalar lives in SMEM.
                pl.BlockSpec(memory_space=pltpu.MemorySpace.SMEM),
                # x tile: tr rows x full spatial extent (lane-dense last dim).
                pl.BlockSpec((tr, HW), lambda i: (i, 0)),
                # weight / bias tiled per block (no resident lane-padded array).
                pl.BlockSpec((tr, 1), lambda i: (i, 0)),
                pl.BlockSpec((tr, 1), lambda i: (i, 0)),
            ],
            out_specs=pl.BlockSpec((tr, HW), lambda i: (i, 0)),
        ),
        compiler_params=pltpu.CompilerParams(
            dimension_semantics=("parallel",),
            vmem_limit_bytes=vmem_limit,
        ),
    )(eps_arr, x2d, w_rows, b_rows)

    return out2d.reshape(N, C, H, W)


def frn_norm_2d_ref(x, weight, bias, eps):
    """Pure-JAX reference matching the PyTorch forward exactly."""
    xf = x.astype(jnp.float32)
    nu2 = jnp.mean(jnp.square(xf), axis=(2, 3), keepdims=True)
    x_normalized = xf * (1.0 / jnp.sqrt(nu2 + jnp.abs(jnp.asarray(eps, jnp.float32))))
    out = (weight.astype(jnp.float32).reshape(1, -1, 1, 1) * x_normalized
           + bias.astype(jnp.float32).reshape(1, -1, 1, 1))
    return out.astype(x.dtype)


def _run_case(key, shape, dtype, atol, rtol):
    N, C, H, W = shape
    kx, kw, kb = jax.random.split(key, 3)
    x = jax.random.normal(kx, (N, C, H, W), dtype=jnp.float32).astype(dtype)
    weight = jnp.ones((C,), jnp.float32) + 0.1 * jax.random.normal(kw, (C,), jnp.float32)
    bias = jnp.zeros((C,), jnp.float32) + 0.1 * jax.random.normal(kb, (C,), jnp.float32)
    eps = jnp.asarray(1e-6, jnp.float32)

    out = jax.block_until_ready(frn_norm_2d(x, weight, bias, eps))
    ref = frn_norm_2d_ref(x, weight, bias, eps)

    assert out.shape == (N, C, H, W)
    assert out.dtype == x.dtype
    err = jnp.max(jnp.abs(out.astype(jnp.float32) - ref.astype(jnp.float32)))
    assert jnp.allclose(out.astype(jnp.float32), ref.astype(jnp.float32),
                        atol=atol, rtol=rtol), f"shape={shape} dtype={dtype} max err {err}"


if __name__ == "__main__":
    key = jax.random.PRNGKey(0)
    k0, k1, k2 = jax.random.split(key, 3)

    # Base case (matches module-scale small shape): single block path.
    _run_case(k0, (2, 4, 16, 16), jnp.float32, atol=1e-5, rtol=1e-5)
    # Ragged case: NC = 12 not a multiple of the 8-row f32 tile (masked last block).
    _run_case(k1, (3, 4, 16, 16), jnp.float32, atol=1e-5, rtol=1e-5)
    # bf16 case: exercises dtype-aware (16-row) sublane packing + f32 compute.
    _run_case(k2, (2, 16, 8, 8), jnp.bfloat16, atol=1e-1, rtol=5e-2)

    print("KERNEL_OK")
</pallas_src>

<mosaic_0001>
module attributes {stable_mosaic.version = 11 : i64} {
  func.func @_frn_kernel(%arg0: i32, %arg1: memref<1xf32, #tpu.memory_space<smem>>, %arg2: memref<8x256xf32, #tpu.memory_space<vmem>>, %arg3: memref<8x1xf32, #tpu.memory_space<vmem>>, %arg4: memref<8x1xf32, #tpu.memory_space<vmem>>, %arg5: memref<8x256xf32, #tpu.memory_space<vmem>>) attributes {dimension_semantics = [#tpu.dimension_semantics<parallel>], iteration_bounds = array<i64: 1>, scalar_prefetch = 0 : i64, scratch_operands = 0 : i64, tpu.core_type = #tpu.core_type<tc>, window_params = [{transform_indices = @transform_0, window_bounds = array<i64: 1>}, {transform_indices = @transform_1, window_bounds = array<i64: 8, 256>}, {transform_indices = @transform_2, window_bounds = array<i64: 8, 1>}, {transform_indices = @transform_3, window_bounds = array<i64: 8, 1>}, {transform_indices = @transform_4, window_bounds = array<i64: 8, 256>}]} {
    %c0 = arith.constant 0 : index
    %c0_0 = arith.constant 0 : index
    %0 = vector.load %arg2[%c0, %c0_0] : memref<8x256xf32, #tpu.memory_space<vmem>>, vector<8x256xf32>
    %1 = arith.mulf %0, %0 : vector<8x256xf32>
    %cst = arith.constant dense<0.000000e+00> : vector<8xf32>
    %2 = vector.multi_reduction <add>, %1, %cst [1] : vector<8x256xf32> to vector<8xf32>
    %3 = vector.shape_cast %2 : vector<8xf32> to vector<8x1xf32>
    %cst_1 = arith.constant 3.906250e-03 : f32
    %4 = vector.broadcast %cst_1 : f32 to vector<8x1xf32>
    %5 = arith.mulf %3, %4 : vector<8x1xf32>
    %c0_2 = arith.constant 0 : index
    %c0_3 = arith.constant 0 : index
    %6 = vector.load %arg3[%c0_2, %c0_3] : memref<8x1xf32, #tpu.memory_space<vmem>>, vector<8x1xf32>
    %c0_4 = arith.constant 0 : index
    %7 = memref.load %arg1[%c0_4] : memref<1xf32, #tpu.memory_space<smem>>
    %8 = vector.broadcast %7 : f32 to vector<8x1xf32>
    %9 = arith.addf %5, %8 : vector<8x1xf32>
    %10 = math.rsqrt %9 : vector<8x1xf32>
    %11 = arith.mulf %6, %10 : vector<8x1xf32>
    %c0_5 = arith.constant 0 : index
    %c0_6 = arith.constant 0 : index
    %12 = vector.load %arg2[%c0_5, %c0_6] : memref<8x256xf32, #tpu.memory_space<vmem>>, vector<8x256xf32>
    %13 = vector.broadcast %11 : vector<8x1xf32> to vector<8x256xf32>
    %14 = arith.mulf %12, %13 : vector<8x256xf32>
    %c0_7 = arith.constant 0 : index
    %c0_8 = arith.constant 0 : index
    %15 = vector.load %arg4[%c0_7, %c0_8] : memref<8x1xf32, #tpu.memory_space<vmem>>, vector<8x1xf32>
    %16 = vector.broadcast %15 : vector<8x1xf32> to vector<8x256xf32>
    %17 = arith.addf %14, %16 : vector<8x256xf32>
    %c0_9 = arith.constant 0 : index
    %c0_10 = arith.constant 0 : index
    %18 = vector.load %arg5[%c0_9, %c0_10] : memref<8x256xf32, #tpu.memory_space<vmem>>, vector<8x256xf32>
    tpu.vector_store %arg5[%c0_9, %c0_10], %17 {strides = array<i32>} : memref<8x256xf32, #tpu.memory_space<vmem>>, vector<8x256xf32>,
    return
  }
  func.func @transform_0(%arg0: i32) -> i32 {
    %c0_i32 = arith.constant 0 : i32
    %c0_i32_0 = arith.constant 0 : i32
    return %c0_i32 : i32
  }
  func.func @transform_1(%arg0: i32) -> (i32, i32) {
    %c0_i32 = arith.constant 0 : i32
    %c0_i32_0 = arith.constant 0 : i32
    return %arg0, %c0_i32 : i32, i32
  }
  func.func @transform_2(%arg0: i32) -> (i32, i32) {
    %c0_i32 = arith.constant 0 : i32
    %c0_i32_0 = arith.constant 0 : i32
    return %arg0, %c0_i32 : i32, i32
  }
  func.func @transform_3(%arg0: i32) -> (i32, i32) {
    %c0_i32 = arith.constant 0 : i32
    %c0_i32_0 = arith.constant 0 : i32
    return %arg0, %c0_i32 : i32, i32
  }
  func.func @transform_4(%arg0: i32) -> (i32, i32) {
    %c0_i32 = arith.constant 0 : i32
    %c0_i32_0 = arith.constant 0 : i32
    return %arg0, %c0_i32 : i32, i32
  }
}

</mosaic_0001>

<bundles_post_ra>
// kernel: tile.1
= control target key start
LH: loop header
LB: loop body
LE: loop exit
PB: predicated region body
PF: predicated region fallthrough
CT: control target
= control target key end

     0   :  { %s34_s8 = smov 125   ;;  %vm7_vm0 = vcmask 7168   ;;  %s35_s11 = smov 126   ;;  %s61_s0 = inlined_call_operand.vmem [shape: f32[2,4], index: 0, kind: input, shape index: {}]   ;;  %s62_s1 = inlined_call_operand.vmem [shape: f32[8,1], index: 1, kind: output, shape index: {}]  }
   0x1   :  { %v4_v0 = vld [vmem:[%s61_s0] sm:$0x3]  ;;  %s33_s0 = smov 127  }
   0x2   :  { %5 = vst [vmem:[#allocation0] sm:$0x3] %v4_v0 }
   0x9   :  { %v9_v1 = vld [vmem:[#allocation0] sm:$0x3]  }
   0xa   :  { %v21_v2 = vld [vmem:[#allocation0] sm:$0x3]   ;;  %10 = vrot.lane.b32.xlu0 %v9_v1, %s33_s0 }
   0xb   :  { %22 = vrot.lane.b32.xlu1 %v21_v2, %s34_s8  ;;  %v6_v3 = vld [vmem:[#allocation0] sm:$0x3]  }
   0xc   :  { %v15_v4 = vld [vmem:[#allocation0] sm:$0x3]   ;;  %8 = vst.msk [vmem:[%s62_s1] ss:$4 sm:$0x3] %vm7_vm0, %v6_v3  }
   0xe   :  { %16 = vrot.lane.b32.xlu0 %v15_v4, %s35_s11 }
  0x7c   :  { %v11_v5 = vpop.permute.xlu0 %10  }
  0x7d   :  { %v23_v6 = vpop.permute.xlu1 %22   ;;  %27 = vst.msk [vmem:[%s62_s1 + $0x1] ss:$4 sm:$0x3] %vm7_vm0, %v11_v5  }
  0x7e   :  { %29 = vst.msk [vmem:[%s62_s1 + $0x3] ss:$4 sm:$0x3] %vm7_vm0, %v23_v6  }
  0x80   :  { %v17_v7 = vpop.permute.xlu0 %16  }
  0x81   :  { %28 = vst.msk [vmem:[%s62_s1 + $0x2] ss:$4 sm:$0x3] %vm7_vm0, %v17_v7  }

// kernel: tile.13
= control target key start
LH: loop header
LB: loop body
LE: loop exit
PB: predicated region body
PF: predicated region fallthrough
CT: control target
= control target key end

     0   :  { %s22_s0 = inlined_call_operand.vmem [shape: f32[4], index: 0, kind: input, shape index: {}]   ;;  %s23_s1 = inlined_call_operand.vmem [shape: f32[2,4], index: 1, kind: output, shape index: {}]  }
   0x1   :  { %v4_v0 = vld [vmem:[%s22_s0] ss:$0 sm:$0xff] }
   0x2   :  { %5 = vst [vmem:[%s23_s1] sm:$0x3] %v4_v0 }

// kernel: frn_norm_2d.1
= control target key start
LH: loop header
LB: loop body
LE: loop exit
PB: predicated region body
PF: predicated region fallthrough
CT: control target
= control target key end

     0   :  { %v58_v5 = vmov 0   ;;  %s105_s1 = inlined_call_operand.vmem [shape: f32[8,256], index: 1, kind: input, shape index: {}]   ;;  %s106_s3 = inlined_call_operand.vmem [shape: f32[8,1], index: 3, kind: input, shape index: {}]   ;;  %s107_s0 = inlined_call_operand.<no memory space> [shape: f32[1], index: 0, kind: input, shape index: {}]   ;;  %s108_s2 = inlined_call_operand.vmem [shape: f32[8,1], index: 2, kind: input, shape index: {}]   ;;  %s109_s4 = inlined_call_operand.vmem [shape: f32[8,256], index: 4, kind: output, shape index: {}]  }
   0x1   :  { %v18_v0 = vld [vmem:[%s105_s1] sm:$0xff]  ;;  %v19_v1 = vld [vmem:[%s105_s1 + $0x8] sm:$0xff]  ;;  %54 = vset.pattern.permute.xlu0 %v58_v5  ;;  %55 = vset.pattern.permute.xlu1 %v58_v5  ;;  %v28_v8 = vstv %s107_s0 }
   0x2   :  { %v20_v2 = vmul.f32 %v18_v0, %v18_v0  ;;  %v21_v3 = vmul.f32 %v19_v1, %v19_v1  ;;  %v39_v6 = vld [vmem:[%s106_s3] sm:$0xff] }
   0x3   :  { %42 = vperm.xlu1 %55, %v39_v6   ;;  %v26_v11 = vld [vmem:[%s108_s2] sm:$0xff] }
   0x4   :  { %v22_v4 = vadd.f32 %v21_v3, %v20_v2 }
   0x6   :  { %23 = vadd.xlane.f32.xlu0 %v22_v4 }
  0x82   :  { %v43_v15 = vpop.permute.xlu1 %42 }
  0x93   :  { %v24_v7 = vpop.xlane.xlu0 %23 }
  0x94   :  { %v25_v9 = vmul.f32 0.00390625, %v24_v7 }
  0x96   :  { %v29_v10 = vadd.f32 %v28_v8, %v25_v9 }
  0x98   :  { %56 = vrsqrt.f32 %v29_v10 }
  0xa2   :  { %v57_v12 = vpop.eup %56 }
  0xa3   :  { %v31_v13 = vmul.f32 %v57_v12, %v26_v11 }
  0xa5   :  { %34 = vperm.xlu0 %54, %v31_v13  }
 0x124   :  { %v35_v14 = vpop.permute.xlu0 %34 }
 0x125   :  { %v37_v16 = vmul.f32 %v35_v14, %v18_v0  ;;  %v38_v17 = vmul.f32 %v35_v14, %v19_v1 }
 0x127   :  { %v45_v18 = vadd.f32 %v43_v15, %v37_v16  ;;  %v46_v19 = vadd.f32 %v43_v15, %v38_v17 }
 0x129   :  { %47 = vst [vmem:[%s109_s4] sm:$0xff] %v45_v18  ;;  %48 = vst [vmem:[%s109_s4 + $0x8] sm:$0xff] %v46_v19 }

</bundles_post_ra>
